<compile_context>
chip_gen: v7x
topology: tpu7x:2x2x1
jax: 0.10.0
libtpu: 0.0.40
codegen_flags: <defaults>
</compile_context>

<pallas_src>
import jax
import jax.numpy as jnp
from jax.experimental import pallas as pl
from jax.experimental.pallas import tpu as pltpu

LANE = 128
SUBLANE = 8


def policy_kernel(x_ref, w1_ref, b1_ref, w2_ref, b2_ref, out_ref):
    x = x_ref[...]                                                # [TB, D_in]
    # Linear 1 (MXU, f32 accumulate) + bias + ReLU in f32.
    h = jnp.dot(x, w1_ref[...], preferred_element_type=jnp.float32) + b1_ref[...]
    h = jnp.maximum(h, 0.0)                                       # [TB, H_pad]
    # Linear 2 (narrow output: only the real out_dim columns exist).
    h = h.astype(w2_ref.dtype)
    logits = jnp.dot(h, w2_ref[...], preferred_element_type=jnp.float32) + b2_ref[...]
    # Numerically stable softmax, exact normalization (no approx reciprocal).
    m = jnp.max(logits, axis=-1, keepdims=True)
    e = jnp.exp(logits - m)
    out_ref[...] = (e / jnp.sum(e, axis=-1, keepdims=True)).astype(out_ref.dtype)


def _round_up(n, m):
    return ((n + m - 1) // m) * m


def prepare_policy_params(w1, b1, w2, b2, *, compute_dtype=jnp.bfloat16):
    """Pad/cast parameters ONCE (hoisted out of the per-call forward).

    w1: [D_in, H]; b1: [1, H]; w2: [H, D_out]; b2: [1, D_out].
    Hidden dim is zero-padded to 128 lanes (VMEM-resident intermediate);
    padded hidden columns contribute exactly 0 (zero w1 cols / b1 / w2 rows).
    """
    d_in, hidden = w1.shape
    out_dim = w2.shape[1]
    hidden_p = _round_up(hidden, LANE)

    w1p = jnp.zeros((d_in, hidden_p), compute_dtype).at[:, :hidden].set(
        w1.astype(compute_dtype))
    b1p = jnp.zeros((1, hidden_p), jnp.float32).at[:, :hidden].set(
        b1.reshape(1, -1).astype(jnp.float32))
    w2p = jnp.zeros((hidden_p, out_dim), compute_dtype).at[:hidden, :].set(
        w2.astype(compute_dtype))
    b2p = b2.reshape(1, -1).astype(jnp.float32)
    return w1p, b1p, w2p, b2p


def policy_forward(x, params, *, block_b=4096, core_parallel=False):
    """x: [B, D_in]; params: output of prepare_policy_params. Returns [B, D_out] f32 probs."""
    w1p, b1p, w2p, b2p = params
    B, d_in = x.shape
    hidden_p = w1p.shape[1]
    out_dim = w2p.shape[1]
    compute_dtype = w1p.dtype

    # Batch tiling: multiple of 8 sublanes; pad B to a multiple of the tile.
    tb = max(SUBLANE, _round_up(min(block_b, B), SUBLANE))
    padded_b = _round_up(B, tb)

    xp = x.astype(compute_dtype)
    if padded_b != B:
        xp = jnp.pad(xp, ((0, padded_b - B), (0, 0)))

    if core_parallel:
        sem = (pltpu.CORE_PARALLEL,)   # split batch grid across v7x's 2 TensorCores
    else:
        sem = ("parallel",)

    out = pl.pallas_call(
        policy_kernel,
        out_shape=jax.ShapeDtypeStruct((padded_b, out_dim), jnp.float32),
        grid=(padded_b // tb,),
        in_specs=[
            pl.BlockSpec((tb, d_in), lambda i: (i, 0)),           # x: tiled over batch
            pl.BlockSpec((d_in, hidden_p), lambda i: (0, 0)),     # w1: resident
            pl.BlockSpec((1, hidden_p), lambda i: (0, 0)),        # b1: resident
            pl.BlockSpec((hidden_p, out_dim), lambda i: (0, 0)),  # w2: resident
            pl.BlockSpec((1, out_dim), lambda i: (0, 0)),         # b2: resident
        ],
        out_specs=pl.BlockSpec((tb, out_dim), lambda i: (i, 0)),  # narrow, unpadded cols
        compiler_params=pltpu.CompilerParams(dimension_semantics=sem),
    )(xp, w1p, b1p, w2p, b2p)

    return out if padded_b == B else out[:B]


def init_params(key, input_dim, hidden_dim, output_dim):
    # PyTorch nn.Linear default init: U(-1/sqrt(fan_in), 1/sqrt(fan_in)).
    # Weights stored as [in, out] (transpose of PyTorch's [out, in]) for x @ W.
    k1, k2, k3, k4 = jax.random.split(key, 4)
    bound1 = 1.0 / jnp.sqrt(input_dim)
    bound2 = 1.0 / jnp.sqrt(hidden_dim)
    w1 = jax.random.uniform(k1, (input_dim, hidden_dim), jnp.float32, -bound1, bound1)
    b1 = jax.random.uniform(k2, (1, hidden_dim), jnp.float32, -bound1, bound1)
    w2 = jax.random.uniform(k3, (hidden_dim, output_dim), jnp.float32, -bound2, bound2)
    b2 = jax.random.uniform(k4, (1, output_dim), jnp.float32, -bound2, bound2)
    return w1, b1, w2, b2


def reference_forward(x, w1, b1, w2, b2):
    h = jnp.maximum(x @ w1 + b1, 0.0)
    return jax.nn.softmax(h @ w2 + b2, axis=-1)


# TODO(synk): if the consumer only samples actions, fuse Gumbel-max sampling
# (pltpu.prng_seed / prng_random_bits) into the epilogue and emit [tb, 1]
# instead of probabilities; kept probabilities here to match nn.Softmax output.

if __name__ == "__main__":
    # Small shapes consistent with the module: observation vector -> action probs.
    batch = 8
    input_dim = 16     # env.observation_space.shape[0] (synthetic)
    hidden_dim = 64
    output_dim = 8     # env.action_space.n (synthetic)

    key = jax.random.PRNGKey(0)
    kx, kp = jax.random.split(key)
    x = jax.random.normal(kx, (batch, input_dim), jnp.float32)
    w1, b1, w2, b2 = init_params(kp, input_dim, hidden_dim, output_dim)
    probs_ref = reference_forward(x, w1, b1, w2, b2)

    # 1) Default bf16-MXU path (x/w1/w2 in bf16, f32 accumulate + f32 softmax).
    params_bf16 = prepare_policy_params(w1, b1, w2, b2)            # prepared once, cached
    probs = jax.block_until_ready(policy_forward(x, params_bf16))
    assert probs.shape == (batch, output_dim)
    assert jnp.allclose(jnp.sum(probs, axis=-1), 1.0, atol=1e-3)   # exact divide -> ~1
    assert jnp.allclose(probs, probs_ref, atol=2e-2, rtol=2e-2)

    # 2) f32 path (tighter tolerance).
    params_f32 = prepare_policy_params(w1, b1, w2, b2, compute_dtype=jnp.float32)
    probs_f32 = jax.block_until_ready(policy_forward(x, params_f32))
    assert jnp.allclose(jnp.sum(probs_f32, axis=-1), 1.0, atol=1e-4)
    assert jnp.allclose(probs_f32, probs_ref, atol=2e-3, rtol=2e-3)

    # 3) Multi-step grid + ragged batch (exercises batch padding / tiling path).
    x_big = jax.random.normal(jax.random.PRNGKey(1), (13, input_dim), jnp.float32)
    probs_big = jax.block_until_ready(
        policy_forward(x_big, params_f32, block_b=8))
    ref_big = reference_forward(x_big, w1, b1, w2, b2)
    assert probs_big.shape == (13, output_dim)
    assert jnp.allclose(probs_big, ref_big, atol=2e-3, rtol=2e-3)

    print("KERNEL_OK")
</pallas_src>

<mosaic_0001>
module attributes {stable_mosaic.version = 11 : i64} {
  func.func @policy_kernel(%arg0: i32, %arg1: memref<8x16xbf16, #tpu.memory_space<vmem>>, %arg2: memref<16x128xbf16, #tpu.memory_space<vmem>>, %arg3: memref<1x128xf32, #tpu.memory_space<vmem>>, %arg4: memref<128x8xbf16, #tpu.memory_space<vmem>>, %arg5: memref<1x8xf32, #tpu.memory_space<vmem>>, %arg6: memref<8x8xf32, #tpu.memory_space<vmem>>) attributes {dimension_semantics = [#tpu.dimension_semantics<parallel>], iteration_bounds = array<i64: 1>, scalar_prefetch = 0 : i64, scratch_operands = 0 : i64, tpu.core_type = #tpu.core_type<tc>, window_params = [{transform_indices = @transform_0, window_bounds = array<i64: 8, 16>}, {pipeline_mode = #tpu.pipeline_mode<synchronous>, transform_indices = @transform_1, window_bounds = array<i64: 16, 128>}, {pipeline_mode = #tpu.pipeline_mode<synchronous>, transform_indices = @transform_2, window_bounds = array<i64: 1, 128>}, {pipeline_mode = #tpu.pipeline_mode<synchronous>, transform_indices = @transform_3, window_bounds = array<i64: 128, 8>}, {pipeline_mode = #tpu.pipeline_mode<synchronous>, transform_indices = @transform_4, window_bounds = array<i64: 1, 8>}, {transform_indices = @transform_5, window_bounds = array<i64: 8, 8>}]} {
    %c0 = arith.constant 0 : index
    %c0_0 = arith.constant 0 : index
    %0 = vector.load %arg1[%c0, %c0_0] : memref<8x16xbf16, #tpu.memory_space<vmem>>, vector<8x16xbf16>
    %c0_1 = arith.constant 0 : index
    %c0_2 = arith.constant 0 : index
    %1 = vector.load %arg2[%c0_1, %c0_2] : memref<16x128xbf16, #tpu.memory_space<vmem>>, vector<16x128xbf16>
    %cst = arith.constant dense<0.000000e+00> : vector<8x128xf32>
    %2 = tpu.matmul %0, %1, %cst {dimension_numbers = #tpu.dot_dimension_numbers<[1], [0], [0], [1], [0, 0, 1, 1], [], []>} : vector<8x16xbf16>, vector<16x128xbf16>, vector<8x128xf32> -> vector<8x128xf32>
    %c0_3 = arith.constant 0 : index
    %c0_4 = arith.constant 0 : index
    %3 = vector.load %arg3[%c0_3, %c0_4] : memref<1x128xf32, #tpu.memory_space<vmem>>, vector<1x128xf32>
    %4 = vector.broadcast %3 : vector<1x128xf32> to vector<8x128xf32>
    %5 = arith.addf %2, %4 : vector<8x128xf32>
    %cst_5 = arith.constant 0.000000e+00 : f32
    %6 = vector.broadcast %cst_5 : f32 to vector<8x128xf32>
    %7 = arith.maximumf %5, %6 : vector<8x128xf32>
    %8 = arith.truncf %7 : vector<8x128xf32> to vector<8x128xbf16>
    %c0_6 = arith.constant 0 : index
    %c0_7 = arith.constant 0 : index
    %9 = vector.load %arg4[%c0_6, %c0_7] : memref<128x8xbf16, #tpu.memory_space<vmem>>, vector<128x8xbf16>
    %cst_8 = arith.constant dense<0.000000e+00> : vector<8x8xf32>
    %10 = tpu.matmul %8, %9, %cst_8 {dimension_numbers = #tpu.dot_dimension_numbers<[1], [0], [0], [1], [0, 0, 1, 1], [], []>} : vector<8x128xbf16>, vector<128x8xbf16>, vector<8x8xf32> -> vector<8x8xf32>
    %c0_9 = arith.constant 0 : index
    %c0_10 = arith.constant 0 : index
    %11 = vector.load %arg5[%c0_9, %c0_10] : memref<1x8xf32, #tpu.memory_space<vmem>>, vector<1x8xf32>
    %12 = vector.broadcast %11 : vector<1x8xf32> to vector<8x8xf32>
    %13 = arith.addf %10, %12 : vector<8x8xf32>
    %cst_11 = arith.constant dense<0xFF800000> : vector<8xf32>
    %14 = vector.multi_reduction <maximumf>, %13, %cst_11 [1] : vector<8x8xf32> to vector<8xf32>
    %15 = vector.shape_cast %14 : vector<8xf32> to vector<8x1xf32>
    %16 = vector.broadcast %15 : vector<8x1xf32> to vector<8x8xf32>
    %17 = arith.subf %13, %16 : vector<8x8xf32>
    %18 = math.exp %17 : vector<8x8xf32>
    %cst_12 = arith.constant dense<0.000000e+00> : vector<8xf32>
    %19 = vector.multi_reduction <add>, %18, %cst_12 [1] : vector<8x8xf32> to vector<8xf32>
    %20 = vector.shape_cast %19 : vector<8xf32> to vector<8x1xf32>
    %21 = vector.broadcast %20 : vector<8x1xf32> to vector<8x8xf32>
    %22 = arith.divf %18, %21 : vector<8x8xf32>
    %c0_13 = arith.constant 0 : index
    %c0_14 = arith.constant 0 : index
    %23 = vector.load %arg6[%c0_13, %c0_14] : memref<8x8xf32, #tpu.memory_space<vmem>>, vector<8x8xf32>
    tpu.vector_store %arg6[%c0_13, %c0_14], %22 {strides = array<i32>} : memref<8x8xf32, #tpu.memory_space<vmem>>, vector<8x8xf32>,
    return
  }
  func.func @transform_0(%arg0: i32) -> (i32, i32) {
    %c0_i32 = arith.constant 0 : i32
    %c0_i32_0 = arith.constant 0 : i32
    return %arg0, %c0_i32 : i32, i32
  }
  func.func @transform_1(%arg0: i32) -> (i32, i32) {
    %c0_i32 = arith.constant 0 : i32
    %c0_i32_0 = arith.constant 0 : i32
    %c0_i32_1 = arith.constant 0 : i32
    return %c0_i32, %c0_i32_0 : i32, i32
  }
  func.func @transform_2(%arg0: i32) -> (i32, i32) {
    %c0_i32 = arith.constant 0 : i32
    %c0_i32_0 = arith.constant 0 : i32
    %c0_i32_1 = arith.constant 0 : i32
    return %c0_i32, %c0_i32_0 : i32, i32
  }
  func.func @transform_3(%arg0: i32) -> (i32, i32) {
    %c0_i32 = arith.constant 0 : i32
    %c0_i32_0 = arith.constant 0 : i32
    %c0_i32_1 = arith.constant 0 : i32
    return %c0_i32, %c0_i32_0 : i32, i32
  }
  func.func @transform_4(%arg0: i32) -> (i32, i32) {
    %c0_i32 = arith.constant 0 : i32
    %c0_i32_0 = arith.constant 0 : i32
    %c0_i32_1 = arith.constant 0 : i32
    return %c0_i32, %c0_i32_0 : i32, i32
  }
  func.func @transform_5(%arg0: i32) -> (i32, i32) {
    %c0_i32 = arith.constant 0 : i32
    %c0_i32_0 = arith.constant 0 : i32
    return %arg0, %c0_i32 : i32, i32
  }
}

</mosaic_0001>

<bundles_post_ra>
// kernel: tpu_custom_call.1
= control target key start
LH: loop header
LB: loop body
LE: loop exit
PB: predicated region body
PF: predicated region fallthrough
CT: control target
= control target key end

     0   :  { %v311_v1 = vmov 0.0   ;;  %vm312_vm0 = vmmov 0   ;;  %vm38_vm1 = vcmask 130048   ;;  %s395_s0 = inlined_call_operand.vmem [shape: bf16[8,16], index: 0, kind: input, shape index: {}]   ;;  %s396_s1 = inlined_call_operand.vmem [shape: bf16[16,128], index: 1, kind: input, shape index: {}]   ;;  %s397_s2 = inlined_call_operand.vmem [shape: f32[1,128], index: 2, kind: input, shape index: {}]   ;;  %s398_s3 = inlined_call_operand.vmem [shape: bf16[128,8], index: 3, kind: input, shape index: {}]   ;;  %s399_s4 = inlined_call_operand.vmem [shape: f32[1,8], index: 4, kind: input, shape index: {}]   ;;  %s400_s5 = inlined_call_operand.hbm [shape: f32[8,8], index: 5, kind: output, shape index: {}]  }
   0x1   :  { %v274_v0 = vld [vmem:[%s396_s1] sm:$0xff]   ;;  %245 = vmatprep.subr.bf16.mxu0 %v311_v1  ;;  %251 = vmatprep.subr.bf16.mxu1 %v311_v1  ;;  %v276_v4 = vld [vmem:[%s398_s3 + $0x8] sm:$0xff]   ;;  %v277_v5 = vld [vmem:[%s398_s3 + $0x10] sm:$0xff]  }
   0x2   :  { %v22_v2 = vld [vmem:[%s395_s0] sm:$0xf]  ;;  %246 = vmatpush3.bf16.msra.mxu0 %v274_v0  ;;  %247 = vmatprep.mubr.msk.bf16.mxu0 %vm312_vm0, %v311_v1 }
   0x3   :  { %v275_v3 = vld [vmem:[%s398_s3] sm:$0xff]   ;;  %267 = vmatprep.mubr.msk.bf16.mxu1 %vm312_vm0, %v311_v1 }
   0x4   :  { %252 = vmatpush3.bf16.msra.mxu1 %v275_v3 }
   0x5   :  { %248 = vmatmul.mubr.msk.bf16.vlgmr.msra.gmra.mrb[0].mxu0 %vm38_vm1, %v22_v2  ;;  %253 = vmatprep.subr.bf16.mxu1 %v311_v1 }
   0x8   :  { %254 = vmatpush3.bf16.msra.mxu1 %v276_v4 }
   0x9   :  { %255 = vmatprep.subr.bf16.mxu1 %v311_v1 }
   0xa   :  { %10 = vsyncpa [#allocation3], 0  ;;  %v278_v6 = vld [vmem:[%s398_s3 + $0x18] sm:$0xff]   ;;  %v279_v7 = vld [vmem:[%s398_s3 + $0x20] sm:$0xff]   ;;  %vm195_vm2 = vcmask 64512  }
   0xb   :  { %v280_v8 = vld [vmem:[%s398_s3 + $0x28] sm:$0xff]   ;;  %v281_v9 = vld [vmem:[%s398_s3 + $0x30] sm:$0xff]   ;;  %v282_v10 = vld [vmem:[%s398_s3 + $0x38] sm:$0xff]  }
   0xc   :  { %256 = vmatpush3.bf16.msra.mxu1 %v277_v5  ;;  %v222_v11 = vld [vmem:[%s397_s2] ss:$0 sm:$0xff]  ;;  %s313_s2 = smov [#allocation2]  }
   0xd   :  { %257 = vmatprep.subr.bf16.mxu1 %v311_v1  ;;  %v225_v19 = vld [vmem:[%s399_s4] ss:$0 sm:$0xff]  ;;  %s214_s3 = sshll.u32 %s313_s2, 4  ;;  %s215_s3 = int_to_ptr.vmem [resolvable:$true] %s214_s3 }
   0xe   :  { %s287_s4 = scalar_lea.vmem %s215_s3, 128  ;;  %p292_p1 = scmp.lt.s32.totalorder %s215_s3, %s215_s3 }
   0xf   :  { %p288_p0 = scmp.ne.s32.totalorder %s215_s3, %s287_s4  ;;  %p293_p2 = scmp.lt.s32.totalorder %s287_s4, %s287_s4 }
  0x10   :  { %258 = vmatpush3.bf16.msra.mxu1 %v278_v6 }
  0x11   :  { %259 = vmatprep.subr.bf16.mxu1 %v311_v1  ;;  %p294_p3 = por %p293_p2, %p292_p1 }
  0x13   :  { %p295_p4 = pnand %p294_p3, %p288_p0 }
  0x14   :  { %260 = vmatpush3.bf16.msra.mxu1 %v279_v7 }
  0x15   :  { %261 = vmatprep.subr.bf16.mxu1 %v311_v1 }
  0x18   :  { %262 = vmatpush3.bf16.msra.mxu1 %v280_v8 }
  0x19   :  { %263 = vmatprep.subr.bf16.mxu1 %v311_v1 }
  0x1c   :  { %264 = vmatpush3.bf16.msra.mxu1 %v281_v9 }
  0x1d   :  { %265 = vmatprep.subr.bf16.mxu1 %v311_v1 }
  0x20   :  { %266 = vmatpush3.bf16.msra.mxu1 %v282_v10 }
  0xd8   :  { %v76_v12 = vpop.f32.mrb[0].mxu0 }
  0xd9   :  { %v77_v13 = vadd.f32 %v222_v11, %v76_v12  ;;  %v249_v14 = vpop.f32.mrb[1].mxu0 }
  0xda   :  { %v79_v15 = vpop.f32.mrb[2].mxu0 }
  0xdb   :  { %v82_v16 = vmax.f32 %v77_v13, 0.0  ;;  %v250_v17 = vpop.f32.mrb[3].mxu0 }
  0xdd   :  { %v83_v18 = vpack.c.bf16 %v82_v16, %v82_v16 }
  0xdf   :  { %268 = vmatmul.mubr.bf16.vlgmr.msra.gmra.mrb[0].mxu1 %v83_v18 }
 0x1b2   :  { %v189_v20 = vpop.f32.mrb[0].mxu1 }
 0x1b3   :  { %v190_v21 = vadd.f32 %v225_v19, %v189_v20  ;;  %v269_v22 = vpop.f32.mrb[1].mxu1 }
 0x1b4   :  { %v192_v23 = vpop.f32.mrb[2].mxu1 }
 0x1b5   :  { %v270_v24 = vpop.f32.mrb[3].mxu1  ;;  %v196_v25 = vsel %vm195_vm2, %v190_v21, -inf }
 0x1b6   :  { %197 = vmax.xlane.f32.xlu0 %v196_v25 }
 0x243   :  { %v198_v26 = vpop.xlane.xlu0 %197 }
 0x244   :  { %v199_v27 = vsub.f32 %v190_v21, %v198_v26 }
 0x246   :  { %v200_v28 = vmul.f32 1.442695, %v199_v27 }
 0x248   :  { %283 = vpow2.f32 %v200_v28 }
 0x252   :  { %v284_v29 = vpop.eup %283 }
 0x253   :  { %v202_v30 = vsel %vm195_vm2, %v284_v29, 0.0 }
 0x254   :  { %203 = vadd.xlane.f32.xlu0 %v202_v30 }
 0x2e1   :  { %v204_v31 = vpop.xlane.xlu0 %203 }
 0x2e2   :  { %285 = vrcp.f32 %v204_v31 }
 0x2ec   :  { %v286_v32 = vpop.eup %285 }
 0x2ed   :  { %v206_v33 = vmul.f32 %v286_v32, %v284_v29 }
 0x2ef   :  { %207 = vst.msk [vmem:[#allocation2] sm:$0xff] %vm195_vm2, %v206_v33 }
 0x2f0   :  { %298 = shalt.err (!%p295_p4)
}
 0x2f1   :  { %s299_s17 = scalar_lea.hbm %s400_s5, 128 }
 0x2f2   :  { %p300_p5 = scmp.ne.s32.totalorder %s400_s5, %s299_s17  ;;  %p303_p6 = scmp.lt.u32.totalorder %s299_s17, %s400_s5 }
 0x2f4   :  { %p305_p7 = pnand %p303_p6, %p300_p5 }
 0x2f6   :  { %308 = shalt.err (!%p305_p7)
}
 0x2f7   :  { %217 = dma.vmem_to_hbm [thread:$0]  %s215_s3, 128, %s400_s5, [#allocation3]  }
 0x2f8   :  { %309 = dma.done.wait [#allocation3], 128  }
 0x2f9   :  { %310 = vsyncadd [#allocation3], 4294967168 }
 0x2fa   :  { %221 = vsyncpa [#allocation3], 1 }

</bundles_post_ra>
